<compile_context>
chip_gen: v7x
topology: tpu7x:2x2x1
jax: 0.10.0
libtpu: 0.0.40
codegen_flags: <defaults>
</compile_context>

<pallas_src>
import numpy as np
import jax
import jax.numpy as jnp
from jax import lax
from jax.experimental import pallas as pl
from jax.experimental.pallas import tpu as pltpu

# ---- constants lifted from the PyTorch module -------------------------------
SOURCES_SUBSET = ["vocals", "accompaniment"]
L = len(SOURCES_SUBSET)
DURATION = 6
HOP_LENGTH = 256
TARGET_SAMPLING_RATE = 10880
STFT_WIDTH = int(TARGET_SAMPLING_RATE * DURATION / HOP_LENGTH + 1)  # = 256
WARP_H = 256
CHUNK = 64  # in-kernel epilogue sub-tile (keeps mag/logm/mask in-register)


# ---- warp grid -> separable bilinear interpolation matrices ------------------
def warpgrid_1d(h, w, warp=True):
    x = np.linspace(-1, 1, w)
    y = np.linspace(-1, 1, h)
    if warp:
        gy = (np.power(21, (y + 1) / 2) - 11) / 10
    else:
        gy = np.log(y * 10 + 11) / np.log(21) * 2 - 1
    return x.astype(np.float64), gy.astype(np.float64)


def interp_matrix(coords, in_size):
    """Row j holds the bilinear weights for normalized coord coords[j]
    (F.grid_sample semantics: align_corners=False, padding_mode='zeros')."""
    out = np.zeros((coords.shape[0], in_size), dtype=np.float32)
    pix = ((coords + 1.0) * in_size - 1.0) / 2.0
    i0 = np.floor(pix).astype(np.int64)
    w1 = (pix - i0).astype(np.float32)
    w0 = 1.0 - w1
    for j in range(coords.shape[0]):
        if 0 <= i0[j] < in_size:
            out[j, i0[j]] += w0[j]
        if 0 <= i0[j] + 1 < in_size:
            out[j, i0[j] + 1] += w1[j]
    return out


# ---- Pallas kernel -----------------------------------------------------------
def _wrapper_kernel(wm_ref, wb_ref, x_ref, wy_ref, wxt_ref, masks_ref, pmags_ref):
    # wm_ref/wb_ref : (L,) f32 in SMEM  -- 1x1-conv stand-in model weights/bias
    # x_ref   : (1, 1, H_in, W_in)  mix channel of x (selected by index_map)
    # wy_ref  : (TM, H_in)          bf16 row-interpolation tile (TM = 128 or 256)
    # wxt_ref : (W_in, STFT_WIDTH)  bf16 column-interpolation matrix (transposed)
    tm = wy_ref.shape[0]
    n_chunks = tm // CHUNK

    xm = x_ref[0, 0].astype(jnp.bfloat16)                               # (H_in, W_in)
    # lane-dense ordering: contract W_in first so the intermediate has 256 lanes.
    # Computed ONCE per grid step (grid is coarsened, so no per-row-tile recompute).
    t = jnp.dot(xm, wxt_ref[...], preferred_element_type=jnp.float32)   # (H_in, 256)
    t_bf = t.astype(jnp.bfloat16)

    def chunk_body(c, carry):
        r0 = pl.multiple_of(c * CHUNK, CHUNK)
        wy_c = wy_ref[pl.ds(r0, CHUNK), :]                               # (CHUNK, H_in)
        mag = jnp.dot(wy_c, t_bf, preferred_element_type=jnp.float32)    # (CHUNK, 256)
        # NOTE: like the PyTorch original, mag == 0 -> -inf (no epsilon clamp).
        logm = jnp.log(mag)
        for l in range(L):
            mask = jnp.maximum(logm * wm_ref[l] + wb_ref[l], 0.0)        # relu(model(.))
            masks_ref[0, l, pl.ds(r0, CHUNK), :] = mask.astype(masks_ref.dtype)
            pmags_ref[0, l, pl.ds(r0, CHUNK), :] = (mask * mag).astype(pmags_ref.dtype)
        return carry

    # unrolled so the LLO scheduler sees the whole epilogue, but chunked so the
    # f32 working set (mag + logm + mask) stays within the 64-vreg file.
    lax.fori_loop(0, n_chunks, chunk_body, 0, unroll=True)


def wrapper_forward(x, wy_bf16, wxt_bf16, w_model, b_model, *, row_tiles=2):
    """x: (N, C, H_in, W_in) float32, NCHW. Returns the PyTorch network_output list.

    row_tiles=2 (TM=128) keeps 2 parallel grid units per batch element for the
    two v7x TensorCores; use row_tiles=1 (TM=256, grid=(N,)) on v5e/v6e.
    """
    N, C, H_in, W_in = x.shape
    assert WARP_H % row_tiles == 0
    tm = WARP_H // row_tiles
    assert tm % CHUNK == 0

    masks, pmags = pl.pallas_call(
        _wrapper_kernel,
        out_shape=(
            jax.ShapeDtypeStruct((N, L, WARP_H, STFT_WIDTH), jnp.bfloat16),
            jax.ShapeDtypeStruct((N, L, WARP_H, STFT_WIDTH), jnp.bfloat16),
        ),
        grid_spec=pltpu.PrefetchScalarGridSpec(
            num_scalar_prefetch=0,
            grid=(N, row_tiles),
            in_specs=[
                pl.BlockSpec(memory_space=pltpu.MemorySpace.SMEM),         # w_model (L,)
                pl.BlockSpec(memory_space=pltpu.MemorySpace.SMEM),         # b_model (L,)
                # select mix channel (C-1) directly in the index_map: no host slice
                pl.BlockSpec((1, 1, H_in, W_in), lambda n, j: (n, C - 1, 0, 0)),
                pl.BlockSpec((tm, H_in), lambda n, j: (j, 0)),             # Wy row tile
                pl.BlockSpec((W_in, STFT_WIDTH), lambda n, j: (0, 0)),     # Wx^T (pinned)
            ],
            out_specs=(
                pl.BlockSpec((1, L, tm, STFT_WIDTH), lambda n, j: (n, 0, j, 0)),
                pl.BlockSpec((1, L, tm, STFT_WIDTH), lambda n, j: (n, 0, j, 0)),
            ),
        ),
        compiler_params=pltpu.CompilerParams(
            dimension_semantics=("parallel", "parallel")),
    )(w_model, b_model, x, wy_bf16, wxt_bf16)

    gt_mags = x[:, :-1]          # (N, C-1, H_in, W_in)
    mix_mag = x[:, -1:]          # (N, 1,   H_in, W_in)
    # matches: [None, pred_mags_sq, gt_mags, mix_mag, None, pred_masks]
    return [None, pmags, gt_mags, mix_mag, None, masks]


if __name__ == "__main__":
    key = jax.random.PRNGKey(0)
    N, C, H_in, W_in = 2, 3, 16, 16          # C = L sources + 1 mix channel
    # spectrogram magnitudes must be positive (log is taken)
    x = jnp.abs(jax.random.normal(key, (N, C, H_in, W_in), jnp.float32)) + 0.5

    gx, gy = warpgrid_1d(WARP_H, STFT_WIDTH, warp=True)
    Wy_f32 = jnp.asarray(interp_matrix(gy, H_in))            # (256, H_in)
    WxT_f32 = jnp.asarray(interp_matrix(gx, W_in).T)         # (W_in, 256)
    Wy = Wy_f32.astype(jnp.bfloat16)
    WxT = WxT_f32.astype(jnp.bfloat16)

    # deterministic stand-in model params (1x1 conv, 1 -> L channels)
    w_model = jnp.array([0.8, -0.5], dtype=jnp.float32)
    b_model = jnp.array([0.1, 0.3], dtype=jnp.float32)

    out = wrapper_forward(x, Wy, WxT, w_model, b_model)
    jax.block_until_ready(out[1])
    jax.block_until_ready(out[5])

    # pure-JAX f32 reference for the fused hot path
    mag_ref = jnp.einsum("oh,nhw,wt->not", Wy_f32, x[:, -1], WxT_f32,
                         precision="highest")
    logm = jnp.log(mag_ref)
    masks_ref = jnp.maximum(
        logm[:, None] * w_model[:, None, None] + b_model[:, None, None], 0.0)
    pmags_ref = masks_ref * mag_ref[:, None]

    assert out[1].shape == (N, L, WARP_H, STFT_WIDTH)
    assert out[5].shape == (N, L, WARP_H, STFT_WIDTH)
    assert jnp.allclose(out[5].astype(jnp.float32), masks_ref, rtol=2e-2, atol=2e-2)
    assert jnp.allclose(out[1].astype(jnp.float32), pmags_ref, rtol=2e-2, atol=2e-2)
    print("KERNEL_OK")
</pallas_src>

<mosaic_0001>
module attributes {stable_mosaic.version = 11 : i64} {
  func.func @_wrapper_kernel(%arg0: i32, %arg1: i32, %arg2: memref<2xf32, #tpu.memory_space<smem>>, %arg3: memref<2xf32, #tpu.memory_space<smem>>, %arg4: memref<1x1x16x16xf32, #tpu.memory_space<vmem>>, %arg5: memref<128x16xbf16, #tpu.memory_space<vmem>>, %arg6: memref<16x256xbf16, #tpu.memory_space<vmem>>, %arg7: memref<1x2x128x256xbf16, #tpu.memory_space<vmem>>, %arg8: memref<1x2x128x256xbf16, #tpu.memory_space<vmem>>) attributes {dimension_semantics = [#tpu.dimension_semantics<parallel>, #tpu.dimension_semantics<parallel>], iteration_bounds = array<i64: 2, 2>, scalar_prefetch = 0 : i64, scratch_operands = 0 : i64, tpu.core_type = #tpu.core_type<tc>, window_params = [{transform_indices = @transform_0, window_bounds = array<i64: 2>}, {transform_indices = @transform_1, window_bounds = array<i64: 2>}, {transform_indices = @transform_2, window_bounds = array<i64: 1, 1, 16, 16>}, {transform_indices = @transform_3, window_bounds = array<i64: 128, 16>}, {pipeline_mode = #tpu.pipeline_mode<synchronous>, transform_indices = @transform_4, window_bounds = array<i64: 16, 256>}, {transform_indices = @transform_5, window_bounds = array<i64: 1, 2, 128, 256>}, {transform_indices = @transform_6, window_bounds = array<i64: 1, 2, 128, 256>}]} {
    %c0 = arith.constant 0 : index
    %c0_0 = arith.constant 0 : index
    %c0_1 = arith.constant 0 : index
    %c0_2 = arith.constant 0 : index
    %0 = vector.load %arg4[%c0, %c0_0, %c0_1, %c0_2] : memref<1x1x16x16xf32, #tpu.memory_space<vmem>>, vector<1x1x16x16xf32>
    %1 = vector.shape_cast %0 : vector<1x1x16x16xf32> to vector<16x16xf32>
    %2 = arith.truncf %1 : vector<16x16xf32> to vector<16x16xbf16>
    %c0_3 = arith.constant 0 : index
    %c0_4 = arith.constant 0 : index
    %3 = vector.load %arg6[%c0_3, %c0_4] : memref<16x256xbf16, #tpu.memory_space<vmem>>, vector<16x256xbf16>
    %cst = arith.constant dense<0.000000e+00> : vector<16x256xf32>
    %4 = tpu.matmul %2, %3, %cst {dimension_numbers = #tpu.dot_dimension_numbers<[1], [0], [0], [1], [0, 0, 1, 1], [], []>} : vector<16x16xbf16>, vector<16x256xbf16>, vector<16x256xf32> -> vector<16x256xf32>
    %5 = arith.truncf %4 : vector<16x256xf32> to vector<16x256xbf16>
    %c0_i32 = arith.constant 0 : i32
    %c64_i32 = arith.constant 64 : i32
    %6 = arith.muli %c0_i32, %c64_i32 : i32
    %7 = tpu.assume_multiple %6, 64 : i32
    %8 = arith.index_cast %7 : i32 to index
    %c0_5 = arith.constant 0 : index
    %9 = vector.load %arg5[%8, %c0_5] : memref<128x16xbf16, #tpu.memory_space<vmem>>, vector<64x16xbf16>
    %cst_6 = arith.constant dense<0.000000e+00> : vector<64x256xf32>
    %10 = tpu.matmul %9, %5, %cst_6 {dimension_numbers = #tpu.dot_dimension_numbers<[1], [0], [0], [1], [0, 0, 1, 1], [], []>} : vector<64x16xbf16>, vector<16x256xbf16>, vector<64x256xf32> -> vector<64x256xf32>
    %11 = math.log %10 : vector<64x256xf32>
    %c0_7 = arith.constant 0 : index
    %12 = memref.load %arg2[%c0_7] : memref<2xf32, #tpu.memory_space<smem>>
    %13 = vector.broadcast %12 : f32 to vector<64x256xf32>
    %14 = arith.mulf %11, %13 : vector<64x256xf32>
    %c0_8 = arith.constant 0 : index
    %15 = memref.load %arg3[%c0_8] : memref<2xf32, #tpu.memory_space<smem>>
    %16 = vector.broadcast %15 : f32 to vector<64x256xf32>
    %17 = arith.addf %14, %16 : vector<64x256xf32>
    %cst_9 = arith.constant 0.000000e+00 : f32
    %18 = vector.broadcast %cst_9 : f32 to vector<64x256xf32>
    %19 = arith.maximumf %17, %18 : vector<64x256xf32>
    %20 = arith.truncf %19 : vector<64x256xf32> to vector<64x256xbf16>
    %c0_10 = arith.constant 0 : index
    %c0_11 = arith.constant 0 : index
    %21 = arith.index_cast %7 : i32 to index
    %c0_12 = arith.constant 0 : index
    %22 = vector.load %arg7[%c0_10, %c0_11, %21, %c0_12] : memref<1x2x128x256xbf16, #tpu.memory_space<vmem>>, vector<1x1x64x256xbf16>
    %23 = vector.shape_cast %22 : vector<1x1x64x256xbf16> to vector<64x256xbf16>
    %24 = vector.shape_cast %20 : vector<64x256xbf16> to vector<1x1x64x256xbf16>
    tpu.vector_store %arg7[%c0_10, %c0_11, %21, %c0_12], %24 {strides = array<i32>} : memref<1x2x128x256xbf16, #tpu.memory_space<vmem>>, vector<1x1x64x256xbf16>,
    %25 = arith.mulf %19, %10 : vector<64x256xf32>
    %26 = arith.truncf %25 : vector<64x256xf32> to vector<64x256xbf16>
    %c0_13 = arith.constant 0 : index
    %c0_14 = arith.constant 0 : index
    %27 = arith.index_cast %7 : i32 to index
    %c0_15 = arith.constant 0 : index
    %28 = vector.load %arg8[%c0_13, %c0_14, %27, %c0_15] : memref<1x2x128x256xbf16, #tpu.memory_space<vmem>>, vector<1x1x64x256xbf16>
    %29 = vector.shape_cast %28 : vector<1x1x64x256xbf16> to vector<64x256xbf16>
    %30 = vector.shape_cast %26 : vector<64x256xbf16> to vector<1x1x64x256xbf16>
    tpu.vector_store %arg8[%c0_13, %c0_14, %27, %c0_15], %30 {strides = array<i32>} : memref<1x2x128x256xbf16, #tpu.memory_space<vmem>>, vector<1x1x64x256xbf16>,
    %c1 = arith.constant 1 : index
    %31 = memref.load %arg2[%c1] : memref<2xf32, #tpu.memory_space<smem>>
    %32 = vector.broadcast %31 : f32 to vector<64x256xf32>
    %33 = arith.mulf %11, %32 : vector<64x256xf32>
    %c1_16 = arith.constant 1 : index
    %34 = memref.load %arg3[%c1_16] : memref<2xf32, #tpu.memory_space<smem>>
    %35 = vector.broadcast %34 : f32 to vector<64x256xf32>
    %36 = arith.addf %33, %35 : vector<64x256xf32>
    %cst_17 = arith.constant 0.000000e+00 : f32
    %37 = vector.broadcast %cst_17 : f32 to vector<64x256xf32>
    %38 = arith.maximumf %36, %37 : vector<64x256xf32>
    %39 = arith.truncf %38 : vector<64x256xf32> to vector<64x256xbf16>
    %c0_18 = arith.constant 0 : index
    %c1_19 = arith.constant 1 : index
    %40 = arith.index_cast %7 : i32 to index
    %c0_20 = arith.constant 0 : index
    %41 = vector.load %arg7[%c0_18, %c1_19, %40, %c0_20] : memref<1x2x128x256xbf16, #tpu.memory_space<vmem>>, vector<1x1x64x256xbf16>
    %42 = vector.shape_cast %41 : vector<1x1x64x256xbf16> to vector<64x256xbf16>
    %43 = vector.shape_cast %39 : vector<64x256xbf16> to vector<1x1x64x256xbf16>
    tpu.vector_store %arg7[%c0_18, %c1_19, %40, %c0_20], %43 {strides = array<i32>} : memref<1x2x128x256xbf16, #tpu.memory_space<vmem>>, vector<1x1x64x256xbf16>,
    %44 = arith.mulf %38, %10 : vector<64x256xf32>
    %45 = arith.truncf %44 : vector<64x256xf32> to vector<64x256xbf16>
    %c0_21 = arith.constant 0 : index
    %c1_22 = arith.constant 1 : index
    %46 = arith.index_cast %7 : i32 to index
    %c0_23 = arith.constant 0 : index
    %47 = vector.load %arg8[%c0_21, %c1_22, %46, %c0_23] : memref<1x2x128x256xbf16, #tpu.memory_space<vmem>>, vector<1x1x64x256xbf16>
    %48 = vector.shape_cast %47 : vector<1x1x64x256xbf16> to vector<64x256xbf16>
    %49 = vector.shape_cast %45 : vector<64x256xbf16> to vector<1x1x64x256xbf16>
    tpu.vector_store %arg8[%c0_21, %c1_22, %46, %c0_23], %49 {strides = array<i32>} : memref<1x2x128x256xbf16, #tpu.memory_space<vmem>>, vector<1x1x64x256xbf16>,
    %c1_i32 = arith.constant 1 : i32
    %c64_i32_24 = arith.constant 64 : i32
    %50 = arith.muli %c1_i32, %c64_i32_24 : i32
    %51 = tpu.assume_multiple %50, 64 : i32
    %52 = arith.index_cast %51 : i32 to index
    %c0_25 = arith.constant 0 : index
    %53 = vector.load %arg5[%52, %c0_25] : memref<128x16xbf16, #tpu.memory_space<vmem>>, vector<64x16xbf16>
    %cst_26 = arith.constant dense<0.000000e+00> : vector<64x256xf32>
    %54 = tpu.matmul %53, %5, %cst_26 {dimension_numbers = #tpu.dot_dimension_numbers<[1], [0], [0], [1], [0, 0, 1, 1], [], []>} : vector<64x16xbf16>, vector<16x256xbf16>, vector<64x256xf32> -> vector<64x256xf32>
    %55 = math.log %54 : vector<64x256xf32>
    %c0_27 = arith.constant 0 : index
    %56 = memref.load %arg2[%c0_27] : memref<2xf32, #tpu.memory_space<smem>>
    %57 = vector.broadcast %56 : f32 to vector<64x256xf32>
    %58 = arith.mulf %55, %57 : vector<64x256xf32>
    %c0_28 = arith.constant 0 : index
    %59 = memref.load %arg3[%c0_28] : memref<2xf32, #tpu.memory_space<smem>>
    %60 = vector.broadcast %59 : f32 to vector<64x256xf32>
    %61 = arith.addf %58, %60 : vector<64x256xf32>
    %cst_29 = arith.constant 0.000000e+00 : f32
    %62 = vector.broadcast %cst_29 : f32 to vector<64x256xf32>
    %63 = arith.maximumf %61, %62 : vector<64x256xf32>
    %64 = arith.truncf %63 : vector<64x256xf32> to vector<64x256xbf16>
    %c0_30 = arith.constant 0 : index
    %c0_31 = arith.constant 0 : index
    %65 = arith.index_cast %51 : i32 to index
    %c0_32 = arith.constant 0 : index
    %66 = vector.load %arg7[%c0_30, %c0_31, %65, %c0_32] : memref<1x2x128x256xbf16, #tpu.memory_space<vmem>>, vector<1x1x64x256xbf16>
    %67 = vector.shape_cast %66 : vector<1x1x64x256xbf16> to vector<64x256xbf16>
    %68 = vector.shape_cast %64 : vector<64x256xbf16> to vector<1x1x64x256xbf16>
    tpu.vector_store %arg7[%c0_30, %c0_31, %65, %c0_32], %68 {strides = array<i32>} : memref<1x2x128x256xbf16, #tpu.memory_space<vmem>>, vector<1x1x64x256xbf16>,
    %69 = arith.mulf %63, %54 : vector<64x256xf32>
    %70 = arith.truncf %69 : vector<64x256xf32> to vector<64x256xbf16>
    %c0_33 = arith.constant 0 : index
    %c0_34 = arith.constant 0 : index
    %71 = arith.index_cast %51 : i32 to index
    %c0_35 = arith.constant 0 : index
    %72 = vector.load %arg8[%c0_33, %c0_34, %71, %c0_35] : memref<1x2x128x256xbf16, #tpu.memory_space<vmem>>, vector<1x1x64x256xbf16>
    %73 = vector.shape_cast %72 : vector<1x1x64x256xbf16> to vector<64x256xbf16>
    %74 = vector.shape_cast %70 : vector<64x256xbf16> to vector<1x1x64x256xbf16>
    tpu.vector_store %arg8[%c0_33, %c0_34, %71, %c0_35], %74 {strides = array<i32>} : memref<1x2x128x256xbf16, #tpu.memory_space<vmem>>, vector<1x1x64x256xbf16>,
    %c1_36 = arith.constant 1 : index
    %75 = memref.load %arg2[%c1_36] : memref<2xf32, #tpu.memory_space<smem>>
    %76 = vector.broadcast %75 : f32 to vector<64x256xf32>
    %77 = arith.mulf %55, %76 : vector<64x256xf32>
    %c1_37 = arith.constant 1 : index
    %78 = memref.load %arg3[%c1_37] : memref<2xf32, #tpu.memory_space<smem>>
    %79 = vector.broadcast %78 : f32 to vector<64x256xf32>
    %80 = arith.addf %77, %79 : vector<64x256xf32>
    %cst_38 = arith.constant 0.000000e+00 : f32
    %81 = vector.broadcast %cst_38 : f32 to vector<64x256xf32>
    %82 = arith.maximumf %80, %81 : vector<64x256xf32>
    %83 = arith.truncf %82 : vector<64x256xf32> to vector<64x256xbf16>
    %c0_39 = arith.constant 0 : index
    %c1_40 = arith.constant 1 : index
    %84 = arith.index_cast %51 : i32 to index
    %c0_41 = arith.constant 0 : index
    %85 = vector.load %arg7[%c0_39, %c1_40, %84, %c0_41] : memref<1x2x128x256xbf16, #tpu.memory_space<vmem>>, vector<1x1x64x256xbf16>
    %86 = vector.shape_cast %85 : vector<1x1x64x256xbf16> to vector<64x256xbf16>
    %87 = vector.shape_cast %83 : vector<64x256xbf16> to vector<1x1x64x256xbf16>
    tpu.vector_store %arg7[%c0_39, %c1_40, %84, %c0_41], %87 {strides = array<i32>} : memref<1x2x128x256xbf16, #tpu.memory_space<vmem>>, vector<1x1x64x256xbf16>,
    %88 = arith.mulf %82, %54 : vector<64x256xf32>
    %89 = arith.truncf %88 : vector<64x256xf32> to vector<64x256xbf16>
    %c0_42 = arith.constant 0 : index
    %c1_43 = arith.constant 1 : index
    %90 = arith.index_cast %51 : i32 to index
    %c0_44 = arith.constant 0 : index
    %91 = vector.load %arg8[%c0_42, %c1_43, %90, %c0_44] : memref<1x2x128x256xbf16, #tpu.memory_space<vmem>>, vector<1x1x64x256xbf16>
    %92 = vector.shape_cast %91 : vector<1x1x64x256xbf16> to vector<64x256xbf16>
    %93 = vector.shape_cast %89 : vector<64x256xbf16> to vector<1x1x64x256xbf16>
    tpu.vector_store %arg8[%c0_42, %c1_43, %90, %c0_44], %93 {strides = array<i32>} : memref<1x2x128x256xbf16, #tpu.memory_space<vmem>>, vector<1x1x64x256xbf16>,
    %c2_i32 = arith.constant 2 : i32
    return
  }
  func.func @transform_0(%arg0: i32, %arg1: i32) -> i32 {
    %c0_i32 = arith.constant 0 : i32
    %c0_i32_0 = arith.constant 0 : i32
    return %c0_i32 : i32
  }
  func.func @transform_1(%arg0: i32, %arg1: i32) -> i32 {
    %c0_i32 = arith.constant 0 : i32
    %c0_i32_0 = arith.constant 0 : i32
    return %c0_i32 : i32
  }
  func.func @transform_2(%arg0: i32, %arg1: i32) -> (i32, i32, i32, i32) {
    %c2_i32 = arith.constant 2 : i32
    %c0_i32 = arith.constant 0 : i32
    %c0_i32_0 = arith.constant 0 : i32
    %c0_i32_1 = arith.constant 0 : i32
    return %arg0, %c2_i32, %c0_i32, %c0_i32_0 : i32, i32, i32, i32
  }
  func.func @transform_3(%arg0: i32, %arg1: i32) -> (i32, i32) {
    %c0_i32 = arith.constant 0 : i32
    %c0_i32_0 = arith.constant 0 : i32
    return %arg1, %c0_i32 : i32, i32
  }
  func.func @transform_4(%arg0: i32, %arg1: i32) -> (i32, i32) {
    %c0_i32 = arith.constant 0 : i32
    %c0_i32_0 = arith.constant 0 : i32
    %c0_i32_1 = arith.constant 0 : i32
    return %c0_i32, %c0_i32_0 : i32, i32
  }
  func.func @transform_5(%arg0: i32, %arg1: i32) -> (i32, i32, i32, i32) {
    %c0_i32 = arith.constant 0 : i32
    %c0_i32_0 = arith.constant 0 : i32
    %c0_i32_1 = arith.constant 0 : i32
    return %arg0, %c0_i32, %arg1, %c0_i32_0 : i32, i32, i32, i32
  }
  func.func @transform_6(%arg0: i32, %arg1: i32) -> (i32, i32, i32, i32) {
    %c0_i32 = arith.constant 0 : i32
    %c0_i32_0 = arith.constant 0 : i32
    %c0_i32_1 = arith.constant 0 : i32
    return %arg0, %c0_i32, %arg1, %c0_i32_0 : i32, i32, i32, i32
  }
}

</mosaic_0001>

<bundles_post_ra>
// kernel: tpu_custom_call.1
= control target key start
LH: loop header
LB: loop body
LE: loop exit
PB: predicated region body
PF: predicated region fallthrough
CT: control target
= control target key end

     0   :  { %s2889_s0 = inlined_call_operand.vmem [shape: f32[2], index: 0, kind: input, shape index: {}]   ;;  %s2890_s1 = inlined_call_operand.vmem [shape: f32[2], index: 1, kind: input, shape index: {}]   ;;  %s2891_s2 = inlined_call_operand.vmem [shape: f32[2,3,16,16], index: 2, kind: input, shape index: {}]   ;;  %s2892_s3 = inlined_call_operand.vmem [shape: bf16[256,16], index: 3, kind: input, shape index: {}]   ;;  %s2893_s4 = inlined_call_operand.vmem [shape: bf16[16,256], index: 4, kind: input, shape index: {}]   ;;  %s2894_s5 = inlined_call_operand.hbm [shape: bf16[2,2,256,256], index: 5, kind: output, shape index: {0}]   ;;  %s2895_s6 = inlined_call_operand.hbm [shape: bf16[2,2,256,256], index: 6, kind: output, shape index: {1}]  }
   0x1   :  { %2900 = sst [smem:[#allocation18_spill]] %s2889_s0 }
   0x2   :  { %2901 = sst [smem:[#allocation19_spill]] %s2890_s1 }
   0x3   :  { %2902 = sst [smem:[#allocation20_spill]] %s2891_s2 }
   0x4   :  { %2903 = sst [smem:[#allocation21_spill]] %s2892_s3 }
   0x5   :  { %12 = vsyncpa [#allocation4], 0 }
   0x6   :  { %13 = vsyncpa [#allocation6], 0 }
   0x7   :  { %14 = vsyncpa [#allocation3], 0 }
   0x8   :  { %16 = vsyncpa [#allocation3 + $0x1], 0 }
   0x9   :  { %17 = vsyncpa [#allocation9], 0 }
   0xa   :  { %19 = vsyncpa [#allocation9 + $0x1], 0  ;;  %s2281_s21 = smov 0   ;;  %s2283_s22 = smov 0  }
   0xb   :  { %s2285_s23 = smov 0   ;;  %s2287_s24 = smov 0  }
   0xc   :  { %s2289_s25 = smov 0   ;;  %s2291_s26 = smov 0  }
   0xd   :  { %s2293_s27 = smov 0   ;;  %s2295_s28 = smov 0  }
   0xe LB: > { %s1683_s29 = sadd.s32 4294967295, %s2227_s28   ;;  %s1684_s30 = sadd.s32 4294967294, %s2227_s28   ;;  %s2227_s28 = sphi %s2295_s28, %s25_s28   ;;  %s2223_s27 = sphi %s2293_s27, %s2924_s27   ;;  %s2219_s26 = sphi %s2291_s26, %s2923_s26   ;;  %s2215_s25 = sphi %s2289_s25, %s2922_s25   ;;  %s2211_s24 = sphi %s2287_s24, %s2921_s24   ;;  %s2207_s23 = sphi %s2285_s23, %s2920_s23   ;;  %s2203_s22 = sphi %s2283_s22, %s2919_s22   ;;  %s2199_s21 = sphi %s2281_s21, %s2918_s21  }
   0xf   : > { %s34_s7 = sadd.s32 1, %s2219_s26  ;;  %s37_s8 = sadd.s32 1, %s2223_s27 }
  0x10   : > { %p35_p0 = scmp.ge.s32.totalorder %s34_s7, 2  ;;  %s161_s9 = sadd.s32 1, %s2207_s23 }
  0x11   : > { %p171_p1 = scmp.ne.s32.totalorder %s2207_s23, %s2203_s22  ;;  %p172_p2 = scmp.eq.s32.totalorder %s1683_s29, 3 }
  0x12   : > { %s2926_s7 = smov (%p35_p0, %s34_s7), 0  ;;  %s2928_s8 = smov (!%p35_p0, %s37_s8), %s2223_s27 }
  0x13   : > { %s157_s10 = ssub.s32 %s2219_s26, %s2926_s7  ;;  %p2333_p3 = por %p172_p2, %p171_p1 }
  0x14   : > { %p39_p4 = scmp.ge.s32.totalorder %s2928_s8, 2  ;;  %p177_p5 = scmp.ne.s32.totalorder %s2203_s22, %s2199_s21 }
  0x15   : > { %s2904_s11 = scalar_select %p2333_p3, 1, 0 }
  0x16   : > { %p178_p6 = scmp.eq.s32.totalorder %s1684_s30, 3  ;;  %p1685_p7 = scmp.ge.s32.totalorder %s2227_s28, 1 }
  0x17   : > { %s2930_s8 = smov (%p39_p4, %s2928_s8), 0  ;;  %p213_p9 = scmp.lt.s32.totalorder %s2227_s28, 5 }
  0x18   : > { %p2342_p8 = por %p178_p6, %p177_p5  ;;  %s156_s13 = ssub.s32 %s2223_s27, %s2930_s8 }
  0x19   : > { %s158_s14 = sor.u32 %s157_s10, %s156_s13  ;;  %p2349_p10 = pnand %p1685_p7, %p213_p9 }
  0x1a   : > { %s2905_s12 = scalar_select %p2342_p8, 1, 0 }
  0x1b   : > { %s2906_s15 = scalar_select %p2349_p10, 1, 0 }
  0x1c   : > { %p159_p11 = scmp.eq.s32.totalorder %s158_s14, 0  ;;  %p2353_p12 = scmp.eq.s32.totalorder %s1683_s29, 0 }
  0x1d   : > { %p1944_p13 = pneg %p2349_p10  ;;  %s2908_s0 = sld [smem:[#allocation18_spill]] }
  0x1e   : > { %s2907_s16 = scalar_select %p2353_p12, 1, 0 }
  0x1f   : > { %s2363_s20 = scalar_select %p159_p11, %s2207_s23, %s161_s9  }
  0x20   : > { %p2367_p0 = pnand %p2353_p12, %p1944_p13  ;;  %s2910_s1 = sld [smem:[#allocation19_spill]] }
  0x22   : > { %p2121_p2 = pneg %p2367_p0 }
  0x23   : > { %s226_s19 = sshll.u32 %s2908_s0, 4  ;;  %s227_s19 = int_to_ptr.vmem [resolvable:$true] %s226_s19 }
  0x24   : > { %s2119_s14 = scalar_lea.vmem %s227_s19, 16  ;;  %p2127_p6 = scmp.lt.s32.totalorder %s227_s19, %s227_s19 }
  0x25   : > { %p2120_p1 = scmp.ne.s32.totalorder %s227_s19, %s2119_s14  ;;  %p2128_p7 = scmp.lt.s32.totalorder %s2119_s14, %s2119_s14 }
  0x26   : > { %s237_s13 = sshll.u32 %s2910_s1, 4  ;;  %s238_s13 = int_to_ptr.vmem [resolvable:$true] %s237_s13 }
  0x27   : > { %p2122_p4 = pnand %p2121_p2, %p2120_p1  ;;  %p2129_p9 = por %p2128_p7, %p2127_p6 }
  0x29   : > { %p2123_p5 = pneg %p2122_p4 }
  0x2b   : > { %p2130_p11 = pnand %p2129_p9, %p2123_p5 }
  0x2d   : > { %2133 = shalt.err (!%p2130_p11)
}
  0x2e   : > { %s2229_s9 = smov [#allocation2]   ;;  %s2134_s17 = scalar_lea.vmem %s238_s13, 16 }
  0x2f   : > { %1947 = dma.vmem_to_smem (!%p2367_p0), %s227_s19, 16, %s2229_s9, [#allocation4]  }
  0x30   : > { %p2135_p13 = scmp.ne.s32.totalorder %s238_s13, %s2134_s17  ;;  %p2142_p12 = scmp.lt.s32.totalorder %s238_s13, %s238_s13 }
  0x31   : > { %p2143_p10 = scmp.lt.s32.totalorder %s2134_s17, %s2134_s17 }
  0x32   : > { %p2137_p8 = pnand %p2135_p13, %p2121_p2 }
  0x33   : > { %p2144_p1 = por %p2143_p10, %p2142_p12 }
  0x34   : > { %p2138_p3 = pneg %p2137_p8 }
  0x36   : > { %p2145_p4 = pnand %p2144_p1, %p2138_p3 }
  0x38   : > { %2148 = shalt.err (!%p2145_p4)
}
  0x39   : > { %s2230_s18 = smov [#allocation5]   ;;  %p2911_p5 = scmp.ne.s32.totalorder %s2906_s15, 0 }
  0x3a   : > { %1950 = dma.vmem_to_smem (!%p2367_p0), %s238_s13, 16, %s2230_s18, [#allocation6]  }
  0x3b   : > { %271 = sbr.rel (%p2911_p5) target bundleno = 650 (0x28a), region = 40  ;;  %p2912_p6 = scmp.ne.s32.totalorder (!%p2911_p5), %s2907_s16, 0 }
  0x42   : > { %2182 = dma.done.wait (%p2912_p6), [#allocation4], 16  }
  0x43   : > { %2184 = vsyncadd (%p2912_p6), [#allocation4], 4294967280 }
  0x44   : > { %2186 = dma.done.wait (%p2912_p6), [#allocation6], 16  }
  0x45   : > { %2188 = vsyncadd (%p2912_p6), [#allocation6], 4294967280 }
  0x46   : > { %281 = sfence }
  0x47   : > { %v2044_v0 = vld [vmem:[%s2893_s4 + $0x4] ss:$8 sps:$4 sm:$0xff]   ;;  %p317_p3 = scmp.lt.s32.totalorder %s2215_s25, 1  ;;  %v2046_v1 = vld [vmem:[%s2893_s4] ss:$8 sps:$4 sm:$0xff]   ;;  %v2231_v2 = vmov 0  }
  0x48   : > { %383 = vmatprep.mubr.bf16.mxu0 %v2231_v2  ;;  %468 = vmatprep.mubr.bf16.mxu1 %v2231_v2  ;;  %s2913_s2 = sld [smem:[#allocation20_spill]]  ;;  %vm347_vm0 = vcmask 130048   ;;  %s1695_s17 = sshll.u32 %s2211_s24, 4 }
  0x49   : > { %351 = vmatprep.subr.bf16.mxu0 %v2044_v0  ;;  %s318_s29 = scalar_select %p317_p3, %s2215_s25, 1 }
  0x4a   : > { %352 = vmatpush1.bf16.msra.mxu0 %v2046_v1  ;;  %p324_p8 = scmp.lt.s32.totalorder %s1695_s17, 31  ;;  %s2914_s3 = sld [smem:[#allocation21_spill]] }
  0x4b   : > { %s1694_s16 = smul.u32 48, %s318_s29  ;;  %s2415_s30 = sand.u32 1, %s2203_s22  }
  0x4c   : > { %s2932_s17 = smov (!%p324_p8, %s1695_s17), 31  ;;  %s541_s29 = sld [smem:[#allocation2]] }
  0x4d   : > { %s1696_s18 = sshll.u32 %s2932_s17, 2  ;;  %s559_s13 = sld [smem:[#allocation5]] }
  0x4e   : > { %s1586_s9 = scalar_lea.vmem %s2913_s2, %s1694_s16  ;;  %s1726_s16 = sld [smem:[#allocation2 + $0x1]] }
  0x4f   : > { %v1697_v3 = vld [vmem:[%s1586_s9 + $0x20] sm:$0xff]  ;;  %v1698_v4 = vld [vmem:[%s1586_s9 + $0x28] sm:$0xff]  ;;  %s1727_s14 = sld [smem:[#allocation5 + $0x1]]  ;;  %s1692_s9 = sshll.u32 %s2415_s30, 8 }
  0x50   : > { %v334_v5 = vpack.c.bf16 %v1698_v4, %v1697_v3  ;;  %s327_s15 = scalar_lea.vmem %s2914_s3, %s1696_s18  ;;  %s2527_s17 = scalar_lea.vmem [#allocation7], %s1692_s9 }
  0x51   : > { %v2047_v12 = vld [vmem:[%s327_s15] sm:$0xff]   ;;  %v2049_v14 = vld [vmem:[%s327_s15 + $0x8] sm:$0xff]   ;;  %v2051_v16 = vld [vmem:[%s327_s15 + $0x10] sm:$0xff]   ;;  %s2545_s18 = scalar_lea.vmem [#allocation8], %s1692_s9  ;;  %s1428_s19 = scalar_lea.sflag [#allocation3], %s2415_s30 }
  0x52   : > { %1701 = vmatmul.mubr.msk.bf16.vlgmr.msra.gmra.mrb[0].mxu0 %vm347_vm0, %v334_v5  ;;  %v2048_v13 = vld [vmem:[%s327_s15 + $0x20] sm:$0xff]   ;;  %v2050_v15 = vld [vmem:[%s327_s15 + $0x28] sm:$0xff]   ;;  %v2052_v17 = vld [vmem:[%s327_s15 + $0x30] sm:$0xff]   ;;  %v2455_v35 = vstv %s541_s29 }
  0x53   : > { %984 = vmatprep.mubr.bf16.mxu0 %v2231_v2  ;;  %v2053_v18 = vld [vmem:[%s327_s15 + $0x18] sm:$0xff]   ;;  %v2465_v42 = vstv %s559_s13 }
  0x54   : > { %v2054_v19 = vld [vmem:[%s327_s15 + $0x38] sm:$0xff]   ;;  %v2457_v36 = vstv %s1726_s16 }
  0x55   : > { %v2467_v43 = vstv %s1727_s14 }
 0x125   : > { %v385_v6 = vpop.f32.mrb[0].mxu0 }
 0x126   : > { %v387_v7 = vpop.f32.mrb[1].mxu0 }
 0x127   : > { %v389_v8 = vpop.f32.mrb[2].mxu0 }
 0x128   : > { %v394_v9 = vpack.c.bf16 %v389_v8, %v385_v6  ;;  %v391_v10 = vpop.f32.mrb[3].mxu0 }
 0x129   : > { %v395_v11 = vpack.c.bf16 %v391_v10, %v387_v7 }
 0x12b   : > { %436 = vmatprep.subr.bf16.mxu1 %v395_v11  ;;  %952 = vmatprep.subr.bf16.mxu0 %v395_v11 }
 0x12c   : > { %437 = vmatpush1.bf16.msra.mxu1 %v394_v9  ;;  %953 = vmatpush1.bf16.msra.mxu0 %v394_v9 }
 0x12f   : > { %1706 = vmatmul.mubr.msk.bf16.vlgmr.msra.gmra.mrb[0].mxu1 %vm347_vm0, %v2047_v12  ;;  %1772 = vmatmul.mubr.msk.bf16.vlgmr.msra.gmra.mrb[4].mxu0 %vm347_vm0, %v2048_v13 }
 0x130   : > { %478 = vmatprep.mubr.bf16.mxu1 %v2231_v2  ;;  %994 = vmatprep.mubr.bf16.mxu0 %v2231_v2 }
 0x137   : > { %1707 = vmatmul.mubr.msk.bf16.gmra.mrb[4].mxu1 %vm347_vm0, %v2049_v14  ;;  %1773 = vmatmul.mubr.msk.bf16.gmra.mrb[8].mxu0 %vm347_vm0, %v2050_v15 }
 0x138   : > { %488 = vmatprep.mubr.bf16.mxu1 %v2231_v2  ;;  %1004 = vmatprep.mubr.bf16.mxu0 %v2231_v2 }
 0x13f   : > { %1708 = vmatmul.mubr.msk.bf16.gmra.mrb[8].mxu1 %vm347_vm0, %v2051_v16  ;;  %1774 = vmatmul.mubr.msk.bf16.gmra.mrb[12].mxu0 %vm347_vm0, %v2052_v17 }
 0x140   : > { %498 = vmatprep.mubr.bf16.mxu1 %v2231_v2  ;;  %1014 = vmatprep.mubr.bf16.mxu0 %v2231_v2 }
 0x147   : > { %1709 = vmatmul.mubr.msk.bf16.gmra.mrb[12].mxu1 %vm347_vm0, %v2053_v18  ;;  %1775 = vmatmul.mubr.msk.bf16.gmra.mrb[16].mxu0 %vm347_vm0, %v2054_v19 }
 0x202   : > { %v2417_v20 = vpop.f32.mrb[0].mxu1  ;;  %v2419_v21 = vpop.f32.mrb[4].mxu0 }
 0x203   : > { %2055 = vlog2.f32 %v2417_v20  ;;  %v2422_v22 = vpop.f32.mrb[1].mxu1  ;;  %v2424_v23 = vpop.f32.mrb[5].mxu0 }
 0x204   : > { %2057 = vlog2.f32 %v2419_v21  ;;  %v2427_v24 = vpop.f32.mrb[2].mxu1  ;;  %v2429_v25 = vpop.f32.mrb[6].mxu0 }
 0x205   : > { %2059 = vlog2.f32 %v2422_v22  ;;  %v2432_v26 = vpop.f32.mrb[3].mxu1  ;;  %v2434_v27 = vpop.f32.mrb[7].mxu0 }
 0x206   : > { %2061 = vlog2.f32 %v2424_v23 }
 0x207   : > { %2063 = vlog2.f32 %v2427_v24 }
 0x208   : > { %2065 = vlog2.f32 %v2429_v25 }
 0x209   : > { %2067 = vlog2.f32 %v2432_v26 }
 0x20a   : > { %2069 = vlog2.f32 %v2434_v27  ;;  %v2441_v28 = vpop.f32.mrb[4].mxu1  ;;  %v2443_v29 = vpop.f32.mrb[8].mxu0 }
 0x20b   : > { %2071 = vlog2.f32 %v2441_v28  ;;  %v2446_v30 = vpop.f32.mrb[5].mxu1  ;;  %v2448_v31 = vpop.f32.mrb[9].mxu0 }
 0x20c   : > { %2073 = vlog2.f32 %v2443_v29  ;;  %v2451_v32 = vpop.f32.mrb[6].mxu1  ;;  %v2453_v33 = vpop.f32.mrb[10].mxu0 }
 0x20d   : > { %v2056_v34 = vpop.eup %2055  ;;  %2075 = vlog2.f32 %v2446_v30  ;;  %v2460_v37 = vpop.f32.mrb[7].mxu1 }
 0x20e   : > { %v2462_v38 = vpop.f32.mrb[11].mxu0  ;;  %v2058_v39 = vpop.eup %2057  ;;  %v510_v40 = vmul.f32 0.6931472, %v2056_v34  ;;  %2077 = vlog2.f32 %v2448_v31 }
 0x20f   : > { %v2060_v41 = vpop.eup %2059  ;;  %v1026_v44 = vmul.f32 0.6931472, %v2058_v39  ;;  %2079 = vlog2.f32 %v2451_v32 }
 0x210   : > { %v2062_v45 = vpop.eup %2061  ;;  %v543_v46 = vmul.f32 %v2455_v35, %v510_v40  ;;  %v728_v47 = vmul.f32 %v2457_v36, %v510_v40  ;;  %v512_v48 = vmul.f32 0.6931472, %v2060_v41  ;;  %2081 = vlog2.f32 %v2453_v33 }
 0x211   : > { %v2064_v49 = vpop.eup %2063  ;;  %v1059_v50 = vmul.f32 %v1026_v44, %v2455_v35  ;;  %v1244_v51 = vmul.f32 %v1026_v44, %v2457_v36  ;;  %v1028_v52 = vmul.f32 0.6931472, %v2062_v45  ;;  %2083 = vlog2.f32 %v2460_v37 }
 0x212   : > { %v2066_v53 = vpop.eup %2065  ;;  %v561_v54 = vadd.f32 %v2465_v42, %v543_v46  ;;  %v746_v55 = vadd.f32 %v2467_v43, %v728_v47  ;;  %v544_v56 = vmul.f32 %v2455_v35, %v512_v48  ;;  %v729_v57 = vmul.f32 %v2457_v36, %v512_v48  ;;  %v2480_v58 = vpop.f32.mrb[8].mxu1 }
 0x213   : > { %v2482_v59 = vpop.f32.mrb[12].mxu0  ;;  %v2068_v60 = vpop.eup %2067  ;;  %v1077_v61 = vadd.f32 %v1059_v50, %v2465_v42  ;;  %v1262_v62 = vadd.f32 %v1244_v51, %v2467_v43  ;;  %v1060_v63 = vmul.f32 %v1028_v52, %v2455_v35  ;;  %v1245_v0 = vmul.f32 %v1028_v52, %v2457_v36 }
 0x214   : > { %v2488_v1 = vpop.f32.mrb[9].mxu1  ;;  %v2490_v2 = vpop.f32.mrb[13].mxu0  ;;  %v577_v4 = vmax.f32 %v561_v54, 0.0  ;;  %v762_v5 = vmax.f32 %v746_v55, 0.0  ;;  %v562_v6 = vadd.f32 %v2465_v42, %v544_v56  ;;  %v747_v7 = vadd.f32 %v2467_v43, %v729_v57 }
 0x215   : > { %v2070_v3 = vpop.eup %2069  ;;  %v2495_v8 = vpop.f32.mrb[10].mxu1  ;;  %v1093_v11 = vmax.f32 %v1077_v61, 0.0  ;;  %v1278_v12 = vmax.f32 %v1262_v62, 0.0  ;;  %v1078_v13 = vadd.f32 %v1060_v63, %v2465_v42  ;;  %v1263_v14 = vadd.f32 %v1245_v0, %v2467_v43 }
 0x216   : > { %v2497_v9 = vpop.f32.mrb[14].mxu0  ;;  %v2499_v10 = vpop.eup %2071  ;;  %v652_v18 = vmul.f32 %v577_v4, %v2417_v20  ;;  %v837_v19 = vmul.f32 %v762_v5, %v2417_v20  ;;  %v578_v34 = vmax.f32 %v562_v6, 0.0  ;;  %v763_v39 = vmax.f32 %v747_v7, 0.0 }
 0x217   : > { %v2503_v15 = vpop.f32.mrb[11].mxu1  ;;  %v2505_v16 = vpop.f32.mrb[15].mxu0  ;;  %v1168_v41 = vmul.f32 %v1093_v11, %v2419_v21  ;;  %v1353_v44 = vmul.f32 %v1278_v12, %v2419_v21  ;;  %v1094_v45 = vmax.f32 %v1078_v13, 0.0  ;;  %v1279_v46 = vmax.f32 %v1263_v14, 0.0 }
 0x218   : > { %v2507_v17 = vpop.eup %2073  ;;  %v1854_v48 = vpack.c.bf16 %v578_v34, %v577_v4  ;;  %v653_v50 = vmul.f32 %v578_v34, %v2422_v22  ;;  %v1870_v51 = vpack.c.bf16 %v763_v39, %v762_v5  ;;  %v838_v52 = vmul.f32 %v763_v39, %v2422_v22 }
 0x219   : > { %v2511_v40 = vpop.eup %2075  ;;  %v1886_v54 = vpack.c.bf16 %v1094_v45, %v1093_v11  ;;  %v1169_v55 = vmul.f32 %v1094_v45, %v2424_v23  ;;  %v1902_v56 = vpack.c.bf16 %v1279_v46, %v1278_v12  ;;  %v1354_v57 = vmul.f32 %v1279_v46, %v2424_v23 }
 0x21a   : > { %v2515_v47 = vpop.eup %2077  ;;  %644 = vst [vmem:[%s2527_s17] sm:$0xff] %v1854_v48  ;;  %v1862_v21 = vpack.c.bf16 %v653_v50, %v652_v18  ;;  %1736 = vst [vmem:[%s2527_s17 + $0x80] sm:$0xff] %v1870_v51  ;;  %v1878_v22 = vpack.c.bf16 %v838_v52, %v837_v19  ;;  %v514_v62 = vmul.f32 0.6931472, %v2064_v49  ;;  %v1030_v63 = vmul.f32 0.6931472, %v2066_v53  ;;  %v2531_v0 = vpop.f32.mrb[12].mxu1 }
 0x21b   : > { %v2519_v20 = vpop.eup %2079  ;;  %v2533_v4 = vpop.f32.mrb[16].mxu0  ;;  %1784 = vst [vmem:[%s2527_s17 + $0x40] sm:$0xff] %v1886_v54  ;;  %v1894_v5 = vpack.c.bf16 %v1169_v55, %v1168_v41  ;;  %1818 = vst [vmem:[%s2527_s17 + $0xc0] sm:$0xff] %v1902_v56  ;;  %v1910_v6 = vpack.c.bf16 %v1354_v57, %v1353_v44  ;;  %v516_v7 = vmul.f32 0.6931472, %v2068_v60  ;;  %2085 = vlog2.f32 %v2462_v38 }
 0x21c   : > { %v2523_v61 = vpop.eup %2081  ;;  %v1032_v11 = vmul.f32 0.6931472, %v2070_v3  ;;  %v2539_v12 = vpop.f32.mrb[13].mxu1  ;;  %718 = vst [vmem:[%s2545_s18] sm:$0xff] %v1862_v21  ;;  %1752 = vst [vmem:[%s2545_s18 + $0x80] sm:$0xff] %v1878_v22  ;;  %v545_v49 = vmul.f32 %v2455_v35, %v514_v62  ;;  %v730_v53 = vmul.f32 %v2457_v36, %v514_v62  ;;  %v1061_v60 = vmul.f32 %v1030_v63, %v2455_v35 }
 0x21d   : > { %v2535_v23 = vpop.eup %2083  ;;  %v2541_v13 = vpop.f32.mrb[17].mxu0  ;;  %v1246_v3 = vmul.f32 %v1030_v63, %v2457_v36  ;;  %1800 = vst [vmem:[%s2545_s18 + $0x40] sm:$0xff] %v1894_v5  ;;  %1834 = vst [vmem:[%s2545_s18 + $0xc0] sm:$0xff] %v1910_v6  ;;  %v546_v19 = vmul.f32 %v2455_v35, %v516_v7  ;;  %v731_v34 = vmul.f32 %v2457_v36, %v516_v7  ;;  %2087 = vlog2.f32 %v2480_v58 }
 0x21e   : > { %v2553_v14 = vpop.f32.mrb[14].mxu1  ;;  %v2555_v18 = vpop.f32.mrb[18].mxu0  ;;  %v1062_v39 = vmul.f32 %v1032_v11, %v2455_v35  ;;  %v1247_v41 = vmul.f32 %v1032_v11, %v2457_v36  ;;  %v563_v46 = vadd.f32 %v2465_v42, %v545_v49  ;;  %v748_v48 = vadd.f32 %v2467_v43, %v730_v53 }
 0x21f   : > { %v2563_v44 = vpop.f32.mrb[15].mxu1  ;;  %v2565_v45 = vpop.f32.mrb[19].mxu0  ;;  %v1079_v50 = vadd.f32 %v1061_v60, %v2465_v42  ;;  %v1264_v51 = vadd.f32 %v1246_v3, %v2467_v43  ;;  %v564_v52 = vadd.f32 %v2465_v42, %v546_v19  ;;  %v749_v54 = vadd.f32 %v2467_v43, %v731_v34 }
 0x220   : > { %v1080_v55 = vadd.f32 %v1062_v39, %v2465_v42  ;;  %v1265_v56 = vadd.f32 %v1247_v41, %v2467_v43  ;;  %v579_v57 = vmax.f32 %v563_v46, 0.0  ;;  %v764_v21 = vmax.f32 %v748_v48, 0.0 }
 0x221   : > { %v1095_v22 = vmax.f32 %v1079_v50, 0.0  ;;  %v1280_v62 = vmax.f32 %v1264_v51, 0.0  ;;  %v580_v63 = vmax.f32 %v564_v52, 0.0  ;;  %v765_v5 = vmax.f32 %v749_v54, 0.0 }
 0x222   : > { %v1096_v6 = vmax.f32 %v1080_v55, 0.0  ;;  %v1281_v7 = vmax.f32 %v1265_v56, 0.0  ;;  %v654_v11 = vmul.f32 %v579_v57, %v2427_v24  ;;  %v839_v49 = vmul.f32 %v764_v21, %v2427_v24 }
 0x223   : > { %v1170_v53 = vmul.f32 %v1095_v22, %v2429_v25  ;;  %v1355_v60 = vmul.f32 %v1280_v62, %v2429_v25  ;;  %v1855_v3 = vpack.c.bf16 %v580_v63, %v579_v57  ;;  %v655_v19 = vmul.f32 %v580_v63, %v2432_v26 }
 0x224   : > { %v1871_v34 = vpack.c.bf16 %v765_v5, %v764_v21  ;;  %v840_v39 = vmul.f32 %v765_v5, %v2432_v26  ;;  %v1887_v41 = vpack.c.bf16 %v1096_v6, %v1095_v22  ;;  %v1171_v46 = vmul.f32 %v1096_v6, %v2434_v27 }
 0x225   : > { %v1903_v48 = vpack.c.bf16 %v1281_v7, %v1280_v62  ;;  %v1356_v24 = vmul.f32 %v1281_v7, %v2434_v27  ;;  %645 = vst [vmem:[%s2527_s17 + $0x8] sm:$0xff] %v1855_v3  ;;  %v1863_v50 = vpack.c.bf16 %v655_v19, %v654_v11  ;;  %v518_v51 = vmul.f32 0.6931472, %v2499_v10 }
 0x226   : > { %1737 = vst [vmem:[%s2527_s17 + $0x88] sm:$0xff] %v1871_v34  ;;  %v1879_v25 = vpack.c.bf16 %v840_v39, %v839_v49  ;;  %v1034_v52 = vmul.f32 0.6931472, %v2507_v17  ;;  %1785 = vst [vmem:[%s2527_s17 + $0x48] sm:$0xff] %v1887_v41  ;;  %v1895_v26 = vpack.c.bf16 %v1171_v46, %v1170_v53  ;;  %v520_v55 = vmul.f32 0.6931472, %v2511_v40 }
 0x227   : > { %1819 = vst [vmem:[%s2527_s17 + $0xc8] sm:$0xff] %v1903_v48  ;;  %v1911_v54 = vpack.c.bf16 %v1356_v24, %v1355_v60  ;;  %v1036_v56 = vmul.f32 0.6931472, %v2515_v47  ;;  %719 = vst [vmem:[%s2545_s18 + $0x8] sm:$0xff] %v1863_v50  ;;  %v547_v27 = vmul.f32 %v2455_v35, %v518_v51  ;;  %v732_v57 = vmul.f32 %v2457_v36, %v518_v51 }
 0x228   : > { %1753 = vst [vmem:[%s2545_s18 + $0x88] sm:$0xff] %v1879_v25  ;;  %v1063_v21 = vmul.f32 %v1034_v52, %v2455_v35  ;;  %v1248_v10 = vmul.f32 %v1034_v52, %v2457_v36  ;;  %1801 = vst [vmem:[%s2545_s18 + $0x48] sm:$0xff] %v1895_v26  ;;  %v548_v17 = vmul.f32 %v2455_v35, %v520_v55  ;;  %2089 = vlog2.f32 %v2482_v59 }
 0x229   : > { %1835 = vst [vmem:[%s2545_s18 + $0xc8] sm:$0xff] %v1911_v54  ;;  %v733_v22 = vmul.f32 %v2457_v36, %v520_v55  ;;  %v1064_v40 = vmul.f32 %v1036_v56, %v2455_v35  ;;  %v1249_v47 = vmul.f32 %v1036_v56, %v2457_v36  ;;  %v565_v62 = vadd.f32 %v2465_v42, %v547_v27 }
 0x22a   : > { %v750_v63 = vadd.f32 %v2467_v43, %v732_v57  ;;  %v1081_v5 = vadd.f32 %v1063_v21, %v2465_v42  ;;  %v1266_v6 = vadd.f32 %v1248_v10, %v2467_v43  ;;  %v566_v7 = vadd.f32 %v2465_v42, %v548_v17 }
 0x22b   : > { %v751_v11 = vadd.f32 %v2467_v43, %v733_v22  ;;  %v1082_v49 = vadd.f32 %v1064_v40, %v2465_v42  ;;  %v1267_v53 = vadd.f32 %v1249_v47, %v2467_v43  ;;  %v581_v60 = vmax.f32 %v565_v62, 0.0 }
 0x22c   : > { %v766_v3 = vmax.f32 %v750_v63, 0.0  ;;  %v1097_v19 = vmax.f32 %v1081_v5, 0.0  ;;  %v1282_v34 = vmax.f32 %v1266_v6, 0.0  ;;  %v582_v39 = vmax.f32 %v566_v7, 0.0 }
 0x22d   : > { %v767_v41 = vmax.f32 %v751_v11, 0.0  ;;  %v1098_v46 = vmax.f32 %v1082_v49, 0.0  ;;  %v1283_v48 = vmax.f32 %v1267_v53, 0.0  ;;  %v656_v24 = vmul.f32 %v581_v60, %v2441_v28 }
 0x22e   : > { %v841_v50 = vmul.f32 %v766_v3, %v2441_v28  ;;  %v1172_v25 = vmul.f32 %v1097_v19, %v2443_v29  ;;  %v1357_v51 = vmul.f32 %v1282_v34, %v2443_v29  ;;  %v1856_v52 = vpack.c.bf16 %v582_v39, %v581_v60 }
 0x22f   : > { %v657_v26 = vmul.f32 %v582_v39, %v2446_v30  ;;  %v1872_v54 = vpack.c.bf16 %v767_v41, %v766_v3  ;;  %v842_v55 = vmul.f32 %v767_v41, %v2446_v30  ;;  %v1888_v56 = vpack.c.bf16 %v1098_v46, %v1097_v19 }
 0x230   : > { %v1173_v27 = vmul.f32 %v1098_v46, %v2448_v31  ;;  %v1904_v57 = vpack.c.bf16 %v1283_v48, %v1282_v34  ;;  %v1358_v28 = vmul.f32 %v1283_v48, %v2448_v31  ;;  %646 = vst [vmem:[%s2527_s17 + $0x10] sm:$0xff] %v1856_v52  ;;  %v522_v10 = vmul.f32 0.6931472, %v2519_v20 }
 0x231   : > { %v1864_v21 = vpack.c.bf16 %v657_v26, %v656_v24  ;;  %1738 = vst [vmem:[%s2527_s17 + $0x90] sm:$0xff] %v1872_v54  ;;  %v1880_v29 = vpack.c.bf16 %v842_v55, %v841_v50  ;;  %v1038_v17 = vmul.f32 0.6931472, %v2523_v61  ;;  %1786 = vst [vmem:[%s2527_s17 + $0x50] sm:$0xff] %v1888_v56  ;;  %v524_v40 = vmul.f32 0.6931472, %v2535_v23  ;;  %v2086_v50 = vpop.eup %2085 }
 0x232   : > { %v1896_v30 = vpack.c.bf16 %v1173_v27, %v1172_v25  ;;  %1820 = vst [vmem:[%s2527_s17 + $0xd0] sm:$0xff] %v1904_v57  ;;  %v1912_v22 = vpack.c.bf16 %v1358_v28, %v1357_v51  ;;  %v549_v31 = vmul.f32 %v2455_v35, %v522_v10  ;;  %v734_v47 = vmul.f32 %v2457_v36, %v522_v10  ;;  %v2088_v52 = vpop.eup %2087 }
 0x233   : > { %720 = vst [vmem:[%s2545_s18 + $0x10] sm:$0xff] %v1864_v21  ;;  %1754 = vst [vmem:[%s2545_s18 + $0x90] sm:$0xff] %v1880_v29  ;;  %v550_v20 = vmul.f32 %v2455_v35, %v524_v40  ;;  %v735_v61 = vmul.f32 %v2457_v36, %v524_v40  ;;  %v1065_v63 = vmul.f32 %v1038_v17, %v2455_v35  ;;  %2091 = vlog2.f32 %v2488_v1  ;;  %v2090_v27 = vpop.eup %2089 }
 0x234   : > { %1802 = vst [vmem:[%s2545_s18 + $0x50] sm:$0xff] %v1896_v30  ;;  %1836 = vst [vmem:[%s2545_s18 + $0xd0] sm:$0xff] %v1912_v22  ;;  %v567_v62 = vadd.f32 %v2465_v42, %v549_v31  ;;  %v752_v23 = vadd.f32 %v2467_v43, %v734_v47  ;;  %v1250_v5 = vmul.f32 %v1038_v17, %v2457_v36  ;;  %2093 = vlog2.f32 %v2490_v2 }
 0x235   : > { %v568_v6 = vadd.f32 %v2465_v42, %v550_v20  ;;  %v753_v7 = vadd.f32 %v2467_v43, %v735_v61  ;;  %v1083_v34 = vadd.f32 %v1065_v63, %v2465_v42  ;;  %2095 = vlog2.f32 %v2495_v8 }
 0x236   : > { %v583_v11 = vmax.f32 %v567_v62, 0.0  ;;  %v768_v49 = vmax.f32 %v752_v23, 0.0  ;;  %v1268_v39 = vadd.f32 %v1250_v5, %v2467_v43  ;;  %2097 = vlog2.f32 %v2497_v9 }
 0x237   : > { %v584_v53 = vmax.f32 %v568_v6, 0.0  ;;  %v769_v60 = vmax.f32 %v753_v7, 0.0  ;;  %v1099_v26 = vmax.f32 %v1083_v34, 0.0  ;;  %2099 = vlog2.f32 %v2503_v15 }
 0x238   : > { %v658_v3 = vmul.f32 %v583_v11, %v2451_v32  ;;  %v843_v19 = vmul.f32 %v768_v49, %v2451_v32  ;;  %v1040_v32 = vmul.f32 0.6931472, %v2086_v50  ;;  %v1284_v54 = vmax.f32 %v1268_v39, 0.0 }
 0x239   : > { %v1857_v41 = vpack.c.bf16 %v584_v53, %v583_v11  ;;  %v659_v46 = vmul.f32 %v584_v53, %v2460_v37  ;;  %v1873_v48 = vpack.c.bf16 %v769_v60, %v768_v49  ;;  %v844_v24 = vmul.f32 %v769_v60, %v2460_v37 }
 0x23a   : > { %v1066_v37 = vmul.f32 %v1040_v32, %v2455_v35  ;;  %v1251_v55 = vmul.f32 %v1040_v32, %v2457_v36  ;;  %v526_v56 = vmul.f32 0.6931472, %v2088_v52  ;;  %2101 = vlog2.f32 %v2505_v16 }
 0x23b   : > { %647 = vst [vmem:[%s2527_s17 + $0x18] sm:$0xff] %v1857_v41  ;;  %v1865_v25 = vpack.c.bf16 %v659_v46, %v658_v3  ;;  %1739 = vst [vmem:[%s2527_s17 + $0x98] sm:$0xff] %v1873_v48  ;;  %v1881_v51 = vpack.c.bf16 %v844_v24, %v843_v19  ;;  %2103 = vlog2.f32 %v2531_v0  ;;  %v1174_v17 = vmul.f32 %v1099_v26, %v2453_v33 }
 0x23c   : > { %v1084_v57 = vadd.f32 %v1066_v37, %v2465_v42  ;;  %v1269_v28 = vadd.f32 %v1251_v55, %v2467_v43  ;;  %v551_v21 = vmul.f32 %v2455_v35, %v526_v56  ;;  %v736_v29 = vmul.f32 %v2457_v36, %v526_v56 }
 0x23d   : > { %721 = vst [vmem:[%s2545_s18 + $0x18] sm:$0xff] %v1865_v25  ;;  %1755 = vst [vmem:[%s2545_s18 + $0x98] sm:$0xff] %v1881_v51  ;;  %v2092_v10 = vpop.eup %2091  ;;  %v1359_v30 = vmul.f32 %v1284_v54, %v2453_v33  ;;  %v1042_v22 = vmul.f32 0.6931472, %v2090_v27  ;;  %2105 = vlog2.f32 %v2533_v4 }
 0x23e   : > { %v1100_v40 = vmax.f32 %v1084_v57, 0.0  ;;  %v1285_v31 = vmax.f32 %v1269_v28, 0.0  ;;  %v569_v47 = vadd.f32 %v2465_v42, %v551_v21  ;;  %v754_v20 = vadd.f32 %v2467_v43, %v736_v29  ;;  %v2094_v63 = vpop.eup %2093 }
 0x23f   : > { %v1067_v61 = vmul.f32 %v1042_v22, %v2455_v35  ;;  %v1252_v62 = vmul.f32 %v1042_v22, %v2457_v36  ;;  %v528_v23 = vmul.f32 0.6931472, %v2092_v10  ;;  %2107 = vlog2.f32 %v2539_v12  ;;  %v2096_v11 = vpop.eup %2095 }
 0x240   : > { %v1889_v33 = vpack.c.bf16 %v1100_v40, %v1099_v26  ;;  %v1175_v5 = vmul.f32 %v1100_v40, %v2462_v38  ;;  %v1905_v6 = vpack.c.bf16 %v1285_v31, %v1284_v54  ;;  %v1360_v7 = vmul.f32 %v1285_v31, %v2462_v38  ;;  %v2098_v19 = vpop.eup %2097 }
 0x241   : > { %v585_v49 = vmax.f32 %v569_v47, 0.0  ;;  %v770_v53 = vmax.f32 %v754_v20, 0.0  ;;  %v1085_v60 = vadd.f32 %v1067_v61, %v2465_v42  ;;  %v1270_v3 = vadd.f32 %v1252_v62, %v2467_v43  ;;  %v2100_v48 = vpop.eup %2099 }
 0x242   : > { %1787 = vst [vmem:[%s2527_s17 + $0x58] sm:$0xff] %v1889_v33  ;;  %v1897_v34 = vpack.c.bf16 %v1175_v5, %v1174_v17  ;;  %1821 = vst [vmem:[%s2527_s17 + $0xd8] sm:$0xff] %v1905_v6  ;;  %v1913_v39 = vpack.c.bf16 %v1360_v7, %v1359_v30  ;;  %v552_v41 = vmul.f32 %v2455_v35, %v528_v23  ;;  %v1044_v26 = vmul.f32 0.6931472, %v2094_v63 }
 0x243   : > { %v737_v46 = vmul.f32 %v2457_v36, %v528_v23  ;;  %v660_v38 = vmul.f32 %v585_v49, %v2480_v58  ;;  %v845_v24 = vmul.f32 %v770_v53, %v2480_v58  ;;  %v1101_v50 = vmax.f32 %v1085_v60, 0.0 }
 0x244   : > { %v1286_v25 = vmax.f32 %v1270_v3, 0.0  ;;  %v2102_v51 = vpop.eup %2101  ;;  %1803 = vst [vmem:[%s2545_s18 + $0x58] sm:$0xff] %v1897_v34  ;;  %1837 = vst [vmem:[%s2545_s18 + $0xd8] sm:$0xff] %v1913_v39  ;;  %v570_v32 = vadd.f32 %v2465_v42, %v552_v41  ;;  %v530_v54 = vmul.f32 0.6931472, %v2096_v11  ;;  %v1068_v21 = vmul.f32 %v1044_v26, %v2455_v35 }
 0x245   : > { %v755_v52 = vadd.f32 %v2467_v43, %v737_v46  ;;  %v2104_v37 = vpop.eup %2103  ;;  %v1176_v55 = vmul.f32 %v1101_v50, %v2482_v59  ;;  %v1046_v27 = vmul.f32 0.6931472, %v2098_v19  ;;  %v532_v57 = vmul.f32 0.6931472, %v2100_v48 }
 0x246   : > { %v1361_v56 = vmul.f32 %v1286_v25, %v2482_v59  ;;  %v586_v28 = vmax.f32 %v570_v32, 0.0  ;;  %v1253_v29 = vmul.f32 %v1044_v26, %v2457_v36  ;;  %v553_v17 = vmul.f32 %v2455_v35, %v530_v54 }
 0x247   : > { %v771_v58 = vmax.f32 %v755_v52, 0.0  ;;  %v2106_v10 = vpop.eup %2105  ;;  %v738_v30 = vmul.f32 %v2457_v36, %v530_v54  ;;  %v1069_v22 = vmul.f32 %v1046_v27, %v2455_v35  ;;  %v1254_v40 = vmul.f32 %v1046_v27, %v2457_v36 }
 0x248   : > { %v1858_v59 = vpack.c.bf16 %v586_v28, %v585_v49  ;;  %v661_v31 = vmul.f32 %v586_v28, %v2488_v1  ;;  %v1086_v62 = vadd.f32 %v1068_v21, %v2465_v42  ;;  %v1271_v23 = vadd.f32 %v1253_v29, %v2467_v43 }
 0x249   : > { %v1874_v47 = vpack.c.bf16 %v771_v58, %v770_v53  ;;  %v846_v20 = vmul.f32 %v771_v58, %v2488_v1  ;;  %v2108_v61 = vpop.eup %2107  ;;  %v571_v63 = vadd.f32 %v2465_v42, %v553_v17  ;;  %v756_v33 = vadd.f32 %v2467_v43, %v738_v30 }
 0x24a   : > { %648 = vst [vmem:[%s2527_s17 + $0x20] sm:$0xff] %v1858_v59  ;;  %v1866_v5 = vpack.c.bf16 %v661_v31, %v660_v38  ;;  %v2705_v7 = vadd.f32 %v1069_v22, %v2465_v42  ;;  %v2708_v1 = vadd.f32 %v1254_v40, %v2467_v43  ;;  %v1102_v11 = vmax.f32 %v1086_v62, 0.0 }
 0x24b   : > { %1740 = vst [vmem:[%s2527_s17 + $0xa0] sm:$0xff] %v1874_v47  ;;  %v1882_v6 = vpack.c.bf16 %v846_v20, %v845_v24  ;;  %v1287_v49 = vmax.f32 %v1271_v23, 0.0  ;;  %v587_v53 = vmax.f32 %v571_v63, 0.0  ;;  %v772_v60 = vmax.f32 %v756_v33, 0.0 }
 0x24c   : > { %722 = vst [vmem:[%s2545_s18 + $0x20] sm:$0xff] %v1866_v5  ;;  %v1103_v3 = vmax.f32 %v2705_v7, 0.0  ;;  %v1288_v19 = vmax.f32 %v2708_v1, 0.0  ;;  %v554_v34 = vmul.f32 %v2455_v35, %v532_v57  ;;  %v739_v39 = vmul.f32 %v2457_v36, %v532_v57 }
 0x24d   : > { %1756 = vst [vmem:[%s2545_s18 + $0xa0] sm:$0xff] %v1882_v6  ;;  %v1890_v41 = vpack.c.bf16 %v1102_v11, %v1101_v50  ;;  %v1177_v46 = vmul.f32 %v1102_v11, %v2490_v2  ;;  %v1906_v48 = vpack.c.bf16 %v1287_v49, %v1286_v25  ;;  %v1362_v38 = vmul.f32 %v1287_v49, %v2490_v2 }
 0x24e   : > { %v662_v24 = vmul.f32 %v587_v53, %v2495_v8  ;;  %v847_v32 = vmul.f32 %v772_v60, %v2495_v8  ;;  %v2721_v52 = vmul.f32 %v1103_v3, %v2497_v9  ;;  %v2724_v26 = vmul.f32 %v1288_v19, %v2497_v9 }
 0x24f   : > { %1788 = vst [vmem:[%s2527_s17 + $0x60] sm:$0xff] %v1890_v41  ;;  %v1898_v54 = vpack.c.bf16 %v1177_v46, %v1176_v55  ;;  %1822 = vst [vmem:[%s2527_s17 + $0xe0] sm:$0xff] %v1906_v48  ;;  %v1914_v50 = vpack.c.bf16 %v1362_v38, %v1361_v56  ;;  %v572_v25 = vadd.f32 %v2465_v42, %v554_v34  ;;  %v1048_v2 = vmul.f32 0.6931472, %v2102_v51 }
 0x250   : > { %v757_v27 = vadd.f32 %v2467_v43, %v739_v39  ;;  %v534_v57 = vmul.f32 0.6931472, %v2104_v37  ;;  %v1050_v28 = vmul.f32 0.6931472, %v2106_v10  ;;  %2109 = vlog2.f32 %v2541_v13 }
 0x251   : > { %1804 = vst [vmem:[%s2545_s18 + $0x60] sm:$0xff] %v1898_v54  ;;  %1838 = vst [vmem:[%s2545_s18 + $0xe0] sm:$0xff] %v1914_v50  ;;  %v588_v8 = vmax.f32 %v572_v25, 0.0  ;;  %v536_v9 = vmul.f32 0.6931472, %v2108_v61  ;;  %2111 = vlog2.f32 %v2553_v14  ;;  %v1070_v55 = vmul.f32 %v1048_v2, %v2455_v35 }
 0x252   : > { %v773_v58 = vmax.f32 %v757_v27, 0.0  ;;  %v1255_v56 = vmul.f32 %v1048_v2, %v2457_v36  ;;  %v555_v21 = vmul.f32 %v2455_v35, %v534_v57  ;;  %v740_v51 = vmul.f32 %v2457_v36, %v534_v57 }
 0x253   : > { %v1859_v37 = vpack.c.bf16 %v588_v8, %v587_v53  ;;  %v663_v29 = vmul.f32 %v588_v8, %v2503_v15  ;;  %v1088_v30 = vadd.f32 %v1070_v55, %v2465_v42  ;;  %v1071_v20 = vmul.f32 %v1050_v28, %v2455_v35 }
 0x254   : > { %v1875_v10 = vpack.c.bf16 %v773_v58, %v772_v60  ;;  %v848_v17 = vmul.f32 %v773_v58, %v2503_v15  ;;  %v1273_v22 = vadd.f32 %v1255_v56, %v2467_v43  ;;  %v573_v40 = vadd.f32 %v2465_v42, %v555_v21 }
 0x255   : > { %v758_v59 = vadd.f32 %v2467_v43, %v740_v51  ;;  %649 = vst [vmem:[%s2527_s17 + $0x28] sm:$0xff] %v1859_v37  ;;  %v1867_v31 = vpack.c.bf16 %v663_v29, %v662_v24  ;;  %v1256_v61 = vmul.f32 %v1050_v28, %v2457_v36  ;;  %v1104_v62 = vmax.f32 %v1088_v30, 0.0 }
 0x256   : > { %1741 = vst [vmem:[%s2527_s17 + $0xa8] sm:$0xff] %v1875_v10  ;;  %v1883_v47 = vpack.c.bf16 %v848_v17, %v847_v32  ;;  %v1289_v15 = vmax.f32 %v1273_v22, 0.0  ;;  %v589_v23 = vmax.f32 %v573_v40, 0.0  ;;  %v1089_v33 = vadd.f32 %v1071_v20, %v2465_v42 }
 0x257   : > { %v774_v63 = vmax.f32 %v758_v59, 0.0  ;;  %723 = vst [vmem:[%s2545_s18 + $0x28] sm:$0xff] %v1867_v31  ;;  %v1274_v5 = vadd.f32 %v1256_v61, %v2467_v43  ;;  %v556_v6 = vmul.f32 %v2455_v35, %v536_v9  ;;  %v741_v7 = vmul.f32 %v2457_v36, %v536_v9 }
 0x258   : > { %1757 = vst [vmem:[%s2545_s18 + $0xa8] sm:$0xff] %v1883_v47  ;;  %v1891_v1 = vpack.c.bf16 %v1104_v62, %v1103_v3  ;;  %v1179_v11 = vmul.f32 %v1104_v62, %v2505_v16  ;;  %v1907_v49 = vpack.c.bf16 %v1289_v15, %v1288_v19  ;;  %v1364_v53 = vmul.f32 %v1289_v15, %v2505_v16 }
 0x259   : > { %v664_v60 = vmul.f32 %v589_v23, %v2531_v0  ;;  %v574_v46 = vadd.f32 %v2465_v42, %v556_v6  ;;  %v759_v3 = vadd.f32 %v2467_v43, %v741_v7  ;;  %v849_v38 = vmul.f32 %v774_v63, %v2531_v0 }
 0x25a   : > { %v2110_v34 = vpop.eup %2109  ;;  %1789 = vst [vmem:[%s2527_s17 + $0x68] sm:$0xff] %v1891_v1  ;;  %v1899_v39 = vpack.c.bf16 %v1179_v11, %v2721_v52  ;;  %1823 = vst [vmem:[%s2527_s17 + $0xe8] sm:$0xff] %v1907_v49  ;;  %v1915_v41 = vpack.c.bf16 %v1364_v53, %v2724_v26  ;;  %v1105_v19 = vmax.f32 %v1089_v33, 0.0  ;;  %2113 = vlog2.f32 %v2555_v18 }
 0x25b   : > { %v2112_v48 = vpop.eup %2111  ;;  %v1052_v24 = vmul.f32 0.6931472, %v2110_v34  ;;  %v1290_v16 = vmax.f32 %v1274_v5, 0.0  ;;  %v590_v32 = vmax.f32 %v574_v46, 0.0  ;;  %v775_v52 = vmax.f32 %v759_v3, 0.0 }
 0x25c   : > { %1805 = vst [vmem:[%s2545_s18 + $0x68] sm:$0xff] %v1899_v39  ;;  %1839 = vst [vmem:[%s2545_s18 + $0xe8] sm:$0xff] %v1915_v41  ;;  %2115 = vlog2.f32 %v2563_v44  ;;  %v538_v50 = vmul.f32 0.6931472, %v2112_v48  ;;  %v1180_v8 = vmul.f32 %v1105_v19, %v2533_v4 }
 0x25d   : > { %v1072_v26 = vmul.f32 %v1052_v24, %v2455_v35  ;;  %v1257_v54 = vmul.f32 %v1052_v24, %v2457_v36  ;;  %2117 = vlog2.f32 %v2565_v45  ;;  %v1860_v0 = vpack.c.bf16 %v590_v32, %v589_v23 }
 0x25e   : > { %v665_v25 = vmul.f32 %v590_v32, %v2539_v12  ;;  %v1876_v27 = vpack.c.bf16 %v775_v52, %v774_v63  ;;  %v850_v2 = vmul.f32 %v775_v52, %v2539_v12  ;;  %v1365_v58 = vmul.f32 %v1290_v16, %v2533_v4 }
 0x25f   : > { %v1090_v57 = vadd.f32 %v1072_v26, %v2465_v42  ;;  %v1275_v28 = vadd.f32 %v1257_v54, %v2467_v43  ;;  %650 = vst [vmem:[%s2527_s17 + $0x30] sm:$0xff] %v1860_v0  ;;  %v557_v51 = vmul.f32 %v2455_v35, %v538_v50  ;;  %v742_v12 = vmul.f32 %v2457_v36, %v538_v50 }
 0x260   : > { %v1868_v9 = vpack.c.bf16 %v665_v25, %v664_v60  ;;  %1742 = vst [vmem:[%s2527_s17 + $0xb0] sm:$0xff] %v1876_v27  ;;  %v1884_v55 = vpack.c.bf16 %v850_v2, %v849_v38 }
 0x261   : > { %v1106_v56 = vmax.f32 %v1090_v57, 0.0  ;;  %v1291_v21 = vmax.f32 %v1275_v28, 0.0  ;;  %v575_v40 = vadd.f32 %v2465_v42, %v557_v51  ;;  %v760_v59 = vadd.f32 %v2467_v43, %v742_v12 }
 0x262   : > { %724 = vst [vmem:[%s2545_s18 + $0x30] sm:$0xff] %v1868_v9  ;;  %1758 = vst [vmem:[%s2545_s18 + $0xb0] sm:$0xff] %v1884_v55 }
 0x263   : > { %v1892_v37 = vpack.c.bf16 %v1106_v56, %v1105_v19  ;;  %v1181_v29 = vmul.f32 %v1106_v56, %v2541_v13  ;;  %v1908_v4 = vpack.c.bf16 %v1291_v21, %v1290_v16  ;;  %v1366_v10 = vmul.f32 %v1291_v21, %v2541_v13 }
 0x264   : > { %v2114_v17 = vpop.eup %2113  ;;  %v591_v23 = vmax.f32 %v575_v40, 0.0  ;;  %v776_v63 = vmax.f32 %v760_v59, 0.0 }
 0x265   : > { %1790 = vst [vmem:[%s2527_s17 + $0x70] sm:$0xff] %v1892_v37  ;;  %v1900_v30 = vpack.c.bf16 %v1181_v29, %v1180_v8  ;;  %1824 = vst [vmem:[%s2527_s17 + $0xf0] sm:$0xff] %v1908_v4  ;;  %v1916_v22 = vpack.c.bf16 %v1366_v10, %v1365_v58  ;;  %v1054_v47 = vmul.f32 0.6931472, %v2114_v17 }
 0x266   : > { %v2116_v31 = vpop.eup %2115  ;;  %v666_v46 = vmul.f32 %v591_v23, %v2553_v14  ;;  %v851_v3 = vmul.f32 %v776_v63, %v2553_v14 }
 0x267   : > { %v2118_v20 = vpop.eup %2117  ;;  %1806 = vst [vmem:[%s2545_s18 + $0x70] sm:$0xff] %v1900_v30  ;;  %1840 = vst [vmem:[%s2545_s18 + $0xf0] sm:$0xff] %v1916_v22  ;;  %v540_v61 = vmul.f32 0.6931472, %v2116_v31  ;;  %v1073_v62 = vmul.f32 %v1054_v47, %v2455_v35  ;;  %v1258_v15 = vmul.f32 %v1054_v47, %v2457_v36 }
 0x268   : > { %v1056_v13 = vmul.f32 0.6931472, %v2118_v20 }
 0x269   : > { %v558_v33 = vmul.f32 %v2455_v35, %v540_v61  ;;  %v743_v5 = vmul.f32 %v2457_v36, %v540_v61  ;;  %v1091_v6 = vadd.f32 %v1073_v62, %v2465_v42  ;;  %v1276_v7 = vadd.f32 %v1258_v15, %v2467_v43 }
 0x26a   : > { %v1074_v1 = vmul.f32 %v1056_v13, %v2455_v35  ;;  %v1259_v11 = vmul.f32 %v1056_v13, %v2457_v36 }
 0x26b   : > { %v576_v49 = vadd.f32 %v2465_v42, %v558_v33  ;;  %v761_v53 = vadd.f32 %v2467_v43, %v743_v5  ;;  %v1107_v60 = vmax.f32 %v1091_v6, 0.0  ;;  %v1292_v34 = vmax.f32 %v1276_v7, 0.0 }
 0x26c   : > { %v1092_v39 = vadd.f32 %v1074_v1, %v2465_v42  ;;  %v1277_v41 = vadd.f32 %v1259_v11, %v2467_v43 }
 0x26d   : > { %v592_v48 = vmax.f32 %v576_v49, 0.0  ;;  %v777_v35 = vmax.f32 %v761_v53, 0.0  ;;  %v1182_v36 = vmul.f32 %v1107_v60, %v2555_v18  ;;  %v1367_v38 = vmul.f32 %v1292_v34, %v2555_v18 }
 0x26e   : > { %v1108_v19 = vmax.f32 %v1092_v39, 0.0  ;;  %v1293_v24 = vmax.f32 %v1277_v41, 0.0 }
 0x26f   : > { %v1861_v16 = vpack.c.bf16 %v592_v48, %v591_v23  ;;  %v667_v42 = vmul.f32 %v592_v48, %v2563_v44  ;;  %v1877_v43 = vpack.c.bf16 %v777_v35, %v776_v63  ;;  %v852_v14 = vmul.f32 %v777_v35, %v2563_v44 }
 0x270   : > { %v1893_v32 = vpack.c.bf16 %v1108_v19, %v1107_v60  ;;  %v1183_v52 = vmul.f32 %v1108_v19, %v2565_v45  ;;  %v1909_v26 = vpack.c.bf16 %v1293_v24, %v1292_v34  ;;  %v1368_v18 = vmul.f32 %v1293_v24, %v2565_v45 }
 0x271   : > { %651 = vst [vmem:[%s2527_s17 + $0x38] sm:$0xff] %v1861_v16  ;;  %v1869_v54 = vpack.c.bf16 %v667_v42, %v666_v46  ;;  %1743 = vst [vmem:[%s2527_s17 + $0xb8] sm:$0xff] %v1877_v43  ;;  %v1885_v50 = vpack.c.bf16 %v852_v14, %v851_v3 }
 0x272   : > { %1791 = vst [vmem:[%s2527_s17 + $0x78] sm:$0xff] %v1893_v32  ;;  %v1901_v0 = vpack.c.bf16 %v1183_v52, %v1182_v36  ;;  %1825 = vst [vmem:[%s2527_s17 + $0xf8] sm:$0xff] %v1909_v26  ;;  %v1917_v25 = vpack.c.bf16 %v1368_v18, %v1367_v38 }
 0x273   : > { %725 = vst [vmem:[%s2545_s18 + $0x38] sm:$0xff] %v1869_v54  ;;  %1759 = vst [vmem:[%s2545_s18 + $0xb8] sm:$0xff] %v1885_v50 }
 0x274   : > { %1807 = vst [vmem:[%s2545_s18 + $0x78] sm:$0xff] %v1901_v0  ;;  %1841 = vst [vmem:[%s2545_s18 + $0xf8] sm:$0xff] %v1917_v25 }
 0x275   : > { %s1918_s15 = sshll.u32 %s2211_s24, 5  ;;  %s1846_s29 = sshll.u32 %s2215_s25, 7 }
 0x276   : > { %s1446_s16 = sadd.s32 %s1918_s15, %s1846_s29  ;;  %s1465_s13 = sshll.u32 %s2527_s17, 4  ;;  %s1466_s13 = int_to_ptr.vmem [resolvable:$true] %s1465_s13 }
 0x277   : > { %s1847_s14 = sshll.u32 %s1446_s16, 6  ;;  %s2232_s1 = smov 2048  }
 0x278   : > { %s1448_s10 = scalar_lea.hbm %s2894_s5, %s1847_s14  ;;  %p2915_p10 = scmp.ne.s32.totalorder %s2904_s11, 0 }
 0x279   : > { %s2233_s2 = smov 4096   ;;  %s2234_s3 = smov 16  }
 0x27a   : > { %1928 = sst [smem:[#allocation11]] (%p2915_p10), %s2232_s1  ;;  %s2235_s24 = smov 128  }
 0x27b   : > { %1929 = sst [smem:[#allocation11 + $0x1]] (%p2915_p10), %s2233_s2  ;;  %s2236_s25 = smov 8  }
 0x27c   : > { %1930 = sst [smem:[#allocation11 + $0x2]] (%p2915_p10), %s2234_s3  ;;  %s2237_s17 = smov [#allocation10]  }
 0x27d   : > { %1931 = sst [smem:[#allocation11 + $0x3]] (%p2915_p10), %s2235_s24  ;;  %s2238_s0 = smov 0  }
 0x27e   : > { %1932 = sst [smem:[#allocation11 + $0x4]] (%p2915_p10), %s2235_s24 }
 0x27f   : > { %1933 = sst [smem:[#allocation11 + $0x5]] (%p2915_p10), %s2236_s25 }
 0x280   : > { %1934 = dma.general (%p2915_p10), %s1466_s13, 4096, %s1448_s10, %s1428_s19, %s2237_s17, [#allocation11], %s2238_s0, 0  }
 0x281   : > { %s1496_s2 = scalar_lea.hbm %s2895_s6, %s1847_s14  ;;  %s1513_s3 = sshll.u32 %s2545_s18, 4  ;;  %s1514_s3 = int_to_ptr.vmem [resolvable:$true] %s1513_s3 }
 0x282   : > { %s2239_s29 = smov 2048   ;;  %s2240_s16 = smov 4096  }
 0x283   : > { %1935 = sst [smem:[#allocation13]] (%p2915_p10), %s2239_s29  ;;  %s2241_s19 = smov 16  }
 0x284   : > { %1936 = sst [smem:[#allocation13 + $0x1]] (%p2915_p10), %s2240_s16  ;;  %s2242_s10 = smov 128  }
 0x285   : > { %1937 = sst [smem:[#allocation13 + $0x2]] (%p2915_p10), %s2241_s19  ;;  %s2243_s13 = smov 8  }
 0x286   : > { %1938 = sst [smem:[#allocation13 + $0x3]] (%p2915_p10), %s2242_s10  ;;  %s2244_s14 = smov [#allocation12]  }
 0x287   : > { %1939 = sst [smem:[#allocation13 + $0x4]] (%p2915_p10), %s2242_s10  ;;  %s2245_s18 = smov 0  }
 0x288   : > { %1940 = sst [smem:[#allocation13 + $0x5]] (%p2915_p10), %s2243_s13  ;;  %s2916_s9 = scalar_lea.sflag [#allocation9], %s2415_s30 }
 0x289   : > { %1941 = dma.general (%p2915_p10), %s1514_s3, 4096, %s1496_s2, %s2916_s9, %s2244_s14, [#allocation13], %s2245_s18, 0  }
 0x28a PF: > { %p1962_p12 = scmp.ge.s32.totalorder %s2227_s28, 2  ;;  %s1541_s24 = sand.u32 1, %s2199_s21  }
 0x28b   : > { %p2917_p0 = scmp.ne.s32.totalorder %s2905_s12, 0  ;;  %s1542_s25 = scalar_lea.sflag [#allocation3], %s1541_s24 }
 0x28d   : > { %p1952_p2 = pnand %p1962_p12, %p2917_p0 }
 0x28f   : > { %2190 = dma.done.wait (!%p1952_p2), %s1542_s25, 4096  }
 0x290   : > { %2192 = vsyncadd (!%p1952_p2), %s1542_s25, 4294963200  ;;  %s1551_s17 = scalar_lea.sflag [#allocation9], %s1541_s24 }
 0x291   : > { %2194 = dma.done.wait (!%p1952_p2), %s1551_s17, 4096  }
 0x292   : > { %2196 = vsyncadd (!%p1952_p2), %s1551_s17, 4294963200  ;;  %s25_s28 = sadd.s32 1, %s2227_s28   ;;  %s2918_s21 = smov %s2203_s22 }
 0x293   : > { %p22_p7 = scmp.ge.s32.totalorder %s25_s28, 6   ;;  %s2919_s22 = smov %s2207_s23 }
 0x294   : > { %s2920_s23 = smov %s2363_s20  ;;  %s2921_s24 = smov %s2219_s26 }
 0x295   : > { %s2922_s25 = smov %s2223_s27  ;;  %s2923_s26 = smov %s2926_s7 }
 0x296   : > { %s2924_s27 = smov %s2930_s8  ;;  %24 = sbr.rel (!%p22_p7) target bundleno = 14 (0xe), region = 123 }
 0x29d   :  { %1556 = vsyncpa [#allocation3], 1 }
 0x29e   :  { %1558 = vsyncpa [#allocation3 + $0x1], 1 }
 0x29f   :  { %1559 = vsyncpa [#allocation9], 1 }
 0x2a0   :  { %1561 = vsyncpa [#allocation9 + $0x1], 1 }
 0x2a1   :  { %1562 = vsyncpa [#allocation4], 1 }
 0x2a2   :  { %1564 = vsyncpa [#allocation4 + $0x1], 1 }
 0x2a3   :  { %1565 = vsyncpa [#allocation6], 1 }

</bundles_post_ra>
